<compile_context>
chip_gen: v7x
topology: tpu7x:2x2x1
jax: 0.10.0
libtpu: 0.0.40
codegen_flags: <defaults>
</compile_context>

<pallas_src>
import math
import functools

import jax
import jax.numpy as jnp
from jax.experimental import pallas as pl
from jax.experimental.pallas import tpu as pltpu


def _trunc_kernel(scal_ref, x_ref, o_ref, *, qn, qp):
    """Elementwise fixed-point truncation: round(clamp(x*alpha, qn, qp)) * (1/alpha)."""
    alpha = scal_ref[0]        # SMEM scalar
    inv_alpha = scal_ref[1]    # SMEM scalar; exact because alpha is a power of two
    xs = x_ref[...].astype(jnp.float32) * alpha
    xs = jnp.clip(xs, qn, qp)
    # torch.round and jnp.round both round-half-to-even -> exact match.
    o_ref[...] = (jnp.round(xs) * inv_alpha).astype(o_ref.dtype)


# ~2 MiB per block: in + out, double-buffered => ~8 MiB, safely under the
# default scoped VMEM on every generation (16 MiB v5e, 32 MiB v6e/v7x).
_TARGET_BLOCK_BYTES = 2 * 1024 * 1024


def _sublane_quantum(itemsize):
    # packing: 4-byte -> 8 sublanes, 2-byte -> 16, 1-byte -> 32
    return {4: 8, 2: 16, 1: 32}.get(itemsize, 8)


def act_truncation_apply(x, radix_position, nbits):
    """Hot path (elementwise quantization) executed in Pallas."""
    qn = float(-(2 ** (nbits - 1)))
    qp = float(2 ** (nbits - 1) - 1)
    rp = jnp.asarray(radix_position, jnp.float32)
    # [alpha, 1/alpha]; both exact powers of two.
    scal = jnp.stack([2.0 ** rp, 2.0 ** (-rp)]).astype(jnp.float32)

    orig_shape = x.shape
    dtype = x.dtype
    itemsize = jnp.dtype(dtype).itemsize
    q = _sublane_quantum(itemsize)

    xf = x.reshape(-1)          # layout-preserving flatten (no copy), keeps dtype
    n = xf.shape[0]

    # Pick the widest lane count that divides n so (rows, lanes) is a free
    # bitcast; only fall back to a (rare) pad copy when 128 does not divide n.
    pad = 0
    for lanes in (1024, 512, 256, 128):
        if n % lanes == 0:
            break
    else:
        lanes = 128
        pad = (-n) % lanes
        xf = jnp.pad(xf, (0, pad))      # rare ragged-tail copy only
    rows = (n + pad) // lanes
    x2 = xf.reshape(rows, lanes)

    # Row tile sized for ~2 MiB blocks in the *HBM* dtype.
    tile_rows = max(q, (_TARGET_BLOCK_BYTES // (lanes * itemsize)) // q * q)
    if rows <= tile_rows:
        if rows >= 2 * q:
            # keep grid length >= 2 so both TensorCores (v7x megacore) get work
            tile_rows = ((rows + 1) // 2 + q - 1) // q * q
        else:
            tile_rows = rows            # single full-extent block (tiny input)
    grid = (pl.cdiv(rows, tile_rows),)  # ragged last block is masked by Pallas

    out2 = pl.pallas_call(
        functools.partial(_trunc_kernel, qn=qn, qp=qp),
        out_shape=jax.ShapeDtypeStruct((rows, lanes), dtype),
        grid=grid,
        in_specs=[
            pl.BlockSpec(memory_space=pltpu.MemorySpace.SMEM),      # [alpha, 1/alpha]
            pl.BlockSpec((tile_rows, lanes), lambda i: (i, 0)),     # x tile
        ],
        out_specs=pl.BlockSpec((tile_rows, lanes), lambda i: (i, 0)),
        compiler_params=pltpu.CompilerParams(
            dimension_semantics=("parallel",)),
    )(scal, x2)

    if pad:
        return out2.reshape(-1)[:n].reshape(orig_shape)
    return out2.reshape(orig_shape)


def act_truncation_calibrate(x, nbits):
    """One-shot radix-position init (only when batch >= 32). Plain-JAX glue."""
    batch_size = x.shape[0]
    k = int(math.sqrt(batch_size))
    topk_vals = jax.lax.top_k(jnp.abs(x).reshape(-1), k)[0]
    il = jnp.log2(topk_vals[-1]) + 1.0
    il = jnp.ceil(il - 1e-05)
    return jnp.asarray(nbits, jnp.float32) - il


class ActTruncation:
    """JAX/Pallas port of models/_modules/bit_pruner.py::ActTruncation (forward)."""

    def __init__(self, **kwargs_q):
        default = {'nbits': 32}
        for kk, vv in default.items():
            kwargs_q.setdefault(kk, vv)
        self.kwargs_q = kwargs_q
        self.nbits = kwargs_q['nbits']
        if self.nbits > 16 or self.nbits <= 0:
            self.radix_position = None
            self.init_state = None
        else:
            # deterministic buffer init, matching torch.zeros(1)
            self.radix_position = jnp.zeros((1,), jnp.float32)
            self.init_state = jnp.zeros((1,), jnp.float32)

    def __call__(self, x):
        if self.radix_position is None:
            return x
        # One-shot calibration mutates Python-side state and forces a host sync;
        # it mirrors the eager PyTorch module and must run outside jax.jit.
        if float(self.init_state[0]) == 0 and x.shape[0] >= 32:
            rp = act_truncation_calibrate(x, self.nbits)
            self.radix_position = jnp.full((1,), rp, jnp.float32)
            print('Initialize radix position of ActTruncation with {}'.format(
                int(self.radix_position[0])))
            self.init_state = jnp.ones((1,), jnp.float32)
        return act_truncation_apply(x, self.radix_position[0], self.nbits)


def _reference(x, radix_position, nbits):
    qn = -(2 ** (nbits - 1))
    qp = 2 ** (nbits - 1) - 1
    alpha = 2.0 ** radix_position
    return (jnp.round(jnp.clip(x.astype(jnp.float32) * alpha, qn, qp)) / alpha).astype(x.dtype)


if __name__ == "__main__":
    key = jax.random.PRNGKey(0)
    x = jax.random.normal(key, (2, 4, 16, 16), jnp.float32) * 4.0  # NCHW

    # nbits=8 -> truncation path active (nbits=32 would be identity)
    mod = ActTruncation(nbits=8)
    y = jax.block_until_ready(mod(x))

    ref = _reference(x, float(mod.radix_position[0]), mod.nbits)
    assert y.shape == x.shape and y.dtype == x.dtype
    assert jnp.allclose(y, ref, atol=1e-6), "mismatch vs reference"

    # also exercise the calibration branch (batch >= 32) once
    key2 = jax.random.PRNGKey(1)
    x_big = jax.random.normal(key2, (32, 4, 8, 8), jnp.float32) * 3.0
    mod2 = ActTruncation(nbits=8)
    y_big = jax.block_until_ready(mod2(x_big))
    ref_big = _reference(x_big, float(mod2.radix_position[0]), mod2.nbits)
    assert jnp.allclose(y_big, ref_big, atol=1e-6), "mismatch vs reference (calibrated)"

    # identity path (nbits=32) sanity check
    mod_id = ActTruncation(nbits=32)
    assert jnp.array_equal(jax.block_until_ready(mod_id(x)), x)

    print("KERNEL_OK")
</pallas_src>

<mosaic_0001>
module attributes {stable_mosaic.version = 11 : i64} {
  func.func @_trunc_kernel(%arg0: i32, %arg1: memref<2xf32, #tpu.memory_space<smem>>, %arg2: memref<2x1024xf32, #tpu.memory_space<vmem>>, %arg3: memref<2x1024xf32, #tpu.memory_space<vmem>>) attributes {dimension_semantics = [#tpu.dimension_semantics<parallel>], iteration_bounds = array<i64: 1>, scalar_prefetch = 0 : i64, scratch_operands = 0 : i64, tpu.core_type = #tpu.core_type<tc>, window_params = [{transform_indices = @transform_0, window_bounds = array<i64: 2>}, {transform_indices = @transform_1, window_bounds = array<i64: 2, 1024>}, {transform_indices = @transform_2, window_bounds = array<i64: 2, 1024>}]} {
    %c0 = arith.constant 0 : index
    %0 = memref.load %arg1[%c0] : memref<2xf32, #tpu.memory_space<smem>>
    %c1 = arith.constant 1 : index
    %1 = memref.load %arg1[%c1] : memref<2xf32, #tpu.memory_space<smem>>
    %c0_0 = arith.constant 0 : index
    %c0_1 = arith.constant 0 : index
    %2 = vector.load %arg2[%c0_0, %c0_1] : memref<2x1024xf32, #tpu.memory_space<vmem>>, vector<2x1024xf32>
    %3 = vector.broadcast %0 : f32 to vector<2x1024xf32>
    %4 = arith.mulf %2, %3 : vector<2x1024xf32>
    %cst = arith.constant -1.280000e+02 : f32
    %cst_2 = arith.constant 1.270000e+02 : f32
    %5 = vector.broadcast %cst : f32 to vector<2x1024xf32>
    %6 = arith.maximumf %5, %4 : vector<2x1024xf32>
    %7 = vector.broadcast %cst_2 : f32 to vector<2x1024xf32>
    %8 = arith.minimumf %7, %6 : vector<2x1024xf32>
    %9 = math.roundeven %8 : vector<2x1024xf32>
    %10 = vector.broadcast %1 : f32 to vector<2x1024xf32>
    %11 = arith.mulf %9, %10 : vector<2x1024xf32>
    %c0_3 = arith.constant 0 : index
    %c0_4 = arith.constant 0 : index
    %12 = vector.load %arg3[%c0_3, %c0_4] : memref<2x1024xf32, #tpu.memory_space<vmem>>, vector<2x1024xf32>
    tpu.vector_store %arg3[%c0_3, %c0_4], %11 {strides = array<i32>} : memref<2x1024xf32, #tpu.memory_space<vmem>>, vector<2x1024xf32>,
    return
  }
  func.func @transform_0(%arg0: i32) -> i32 {
    %c0_i32 = arith.constant 0 : i32
    %c0_i32_0 = arith.constant 0 : i32
    return %c0_i32 : i32
  }
  func.func @transform_1(%arg0: i32) -> (i32, i32) {
    %c0_i32 = arith.constant 0 : i32
    %c0_i32_0 = arith.constant 0 : i32
    return %arg0, %c0_i32 : i32, i32
  }
  func.func @transform_2(%arg0: i32) -> (i32, i32) {
    %c0_i32 = arith.constant 0 : i32
    %c0_i32_0 = arith.constant 0 : i32
    return %arg0, %c0_i32 : i32, i32
  }
}

</mosaic_0001>

<bundles_post_ra>
// kernel: tpu_custom_call.1
= control target key start
LH: loop header
LB: loop body
LE: loop exit
PB: predicated region body
PF: predicated region fallthrough
CT: control target
= control target key end

     0   :  { %7 = vsyncpa [#allocation5], 0  ;;  %s189_s0 = inlined_call_operand.hbm [shape: f32[2], index: 0, kind: input, shape index: {}]   ;;  %s190_s1 = inlined_call_operand.hbm [shape: f32[2,1024], index: 1, kind: input, shape index: {}]   ;;  %s191_s2 = inlined_call_operand.hbm [shape: f32[2,1024], index: 2, kind: output, shape index: {}]  }
   0x1   :  { %8 = vsyncpa [#allocation3], 0 }
   0x2   :  { %9 = vsyncpa [#allocation4], 0  ;;  %s75_s11 = scalar_lea.hbm %s189_s0, 16 }
   0x3   :  { %p76_p0 = scmp.ne.s32.totalorder %s189_s0, %s75_s11  ;;  %p79_p1 = scmp.lt.u32.totalorder %s75_s11, %s189_s0 }
   0x5   :  { %p81_p2 = pnand %p79_p1, %p76_p0 }
   0x7   :  { %84 = shalt.err (!%p81_p2)
}
   0x8   :  { %s135_s16 = smov [#allocation2]   ;;  %s136_s19 = smov [#allocation6]  }
   0x9   :  { %17 = dma.hbm_to_smem %s189_s0, 16, %s135_s16, [#allocation5]  }
   0xa   :  { %s24_s20 = sshll.u32 %s136_s19, 4  ;;  %s85_s23 = scalar_lea.hbm %s190_s1, 256  ;;  %s25_s20 = int_to_ptr.vmem [resolvable:$true] %s24_s20 }
   0xb   :  { %p86_p3 = scmp.ne.s32.totalorder %s190_s1, %s85_s23  ;;  %p89_p4 = scmp.lt.u32.totalorder %s85_s23, %s190_s1 }
   0xd   :  { %p91_p5 = pnand %p89_p4, %p86_p3 }
   0xf   :  { %94 = shalt.err (!%p91_p5)
}
  0x10   :  { %s95_s28 = scalar_lea.vmem %s25_s20, 256  ;;  %p100_p7 = scmp.lt.s32.totalorder %s25_s20, %s25_s20 }
  0x11   :  { %p96_p6 = scmp.ne.s32.totalorder %s25_s20, %s95_s28  ;;  %p101_p8 = scmp.lt.s32.totalorder %s95_s28, %s95_s28 }
  0x13   :  { %p102_p9 = por %p101_p8, %p100_p7 }
  0x15   :  { %p103_p10 = pnand %p102_p9, %p96_p6 }
  0x17   :  { %106 = shalt.err (!%p103_p10)
}
  0x18   :  { %27 = dma.hbm_to_vmem [thread:$0]  %s190_s1, 256, %s25_s20, [#allocation3]  }
  0x19   :  { %129 = dma.done.wait [#allocation5], 16  }
  0x1a   :  { %130 = vsyncadd [#allocation5], 4294967280 }
  0x1b   :  { %131 = dma.done.wait [#allocation3], 256  }
  0x1c   :  { %132 = vsyncadd [#allocation3], 4294967040 }
  0x1d   :  { %34 = sfence }
  0x1e   :  { %s35_s30 = sld [smem:[#allocation2]]  ;;  %s69_s3 = sld [smem:[#allocation2 + $0x1]]  ;;  %v37_v0 = vld [vmem:[#allocation6] sm:$0xff]  ;;  %v38_v1 = vld [vmem:[#allocation6 + $0x8] sm:$0xff] }
  0x1f   :  { %s137_s4 = smov [#allocation7]  }
  0x20   :  { %s59_s5 = sshll.u32 %s137_s4, 4  ;;  %s60_s5 = int_to_ptr.vmem [resolvable:$true] %s59_s5 }
  0x21   :  { %s107_s1 = scalar_lea.vmem %s60_s5, 256  ;;  %p112_p12 = scmp.lt.s32.totalorder %s60_s5, %s60_s5 }
  0x22   :  { %p108_p11 = scmp.ne.s32.totalorder %s60_s5, %s107_s1  ;;  %p113_p13 = scmp.lt.s32.totalorder %s107_s1, %s107_s1 }
  0x24   :  { %v39_v2 = vstv %s35_s30  ;;  %v48_v9 = vstv %s69_s3  ;;  %p114_p0 = por %p113_p13, %p112_p12 }
  0x25   :  { %v40_v3 = vmul.f32 %v39_v2, %v37_v0  ;;  %v41_v4 = vmul.f32 %v39_v2, %v38_v1 }
  0x26   :  { %p115_p1 = pnand %p114_p0, %p108_p11 }
  0x27   :  { %v42_v5 = vmax.f32 %v40_v3, -128.0  ;;  %v43_v6 = vmax.f32 %v41_v4, -128.0 }
  0x29   :  { %v44_v7 = vmin.f32 %v42_v5, 127.0  ;;  %v45_v8 = vmin.f32 %v43_v6, 127.0 }
  0x2b   :  { %v70_v10 = vround.rtne.f32 %v44_v7  ;;  %v71_v11 = vround.rtne.f32 %v45_v8 }
  0x2d   :  { %v49_v12 = vmul.f32 %v70_v10, %v48_v9  ;;  %v50_v13 = vmul.f32 %v71_v11, %v48_v9 }
  0x2f   :  { %51 = vst [vmem:[#allocation7] sm:$0xff] %v49_v12  ;;  %52 = vst [vmem:[#allocation7 + $0x8] sm:$0xff] %v50_v13 }
  0x30   :  { %118 = shalt.err (!%p115_p1)
}
  0x31   :  { %s119_s8 = scalar_lea.hbm %s191_s2, 256 }
  0x32   :  { %p120_p2 = scmp.ne.s32.totalorder %s191_s2, %s119_s8  ;;  %p123_p3 = scmp.lt.u32.totalorder %s119_s8, %s191_s2 }
  0x34   :  { %p125_p4 = pnand %p123_p3, %p120_p2 }
  0x36   :  { %128 = shalt.err (!%p125_p4)
}
  0x37   :  { %62 = dma.vmem_to_hbm [thread:$0]  %s60_s5, 256, %s191_s2, [#allocation4]  }
  0x38   :  { %133 = dma.done.wait [#allocation4], 256  }
  0x39   :  { %134 = vsyncadd [#allocation4], 4294967040 }
  0x3a   :  { %66 = vsyncpa [#allocation3], 1 }
  0x3b   :  { %67 = vsyncpa [#allocation4], 1 }
  0x3c   :  { %68 = vsyncpa [#allocation5], 1 }

</bundles_post_ra>
